<compile_context>
chip_gen: v7x
topology: tpu7x:2x2x1
jax: 0.10.0
libtpu: 0.0.40
codegen_flags: <defaults>
</compile_context>

<pallas_src>
import functools

import jax
import jax.numpy as jnp
import numpy as np
from jax.experimental import pallas as pl
from jax.experimental.pallas import tpu as pltpu


def _round_up(x, m):
    return ((int(x) + m - 1) // m) * m


def _num_tensorcores():
    """Best-effort TensorCores-per-device (2 on megacore / dual-TC chips)."""
    try:
        kind = jax.devices()[0].device_kind.lower()
        if any(t in kind for t in ("v4", "v5p", "v7")):
            return 2
    except Exception:
        pass
    return 1


def _dc_ce_stats_kernel(x_ref, y_ref, tp_ref, sp_ref, sy_ref, ce_ref, *,
                        n_classes, square_dice, s_valid, s_blk, n_blk, masked):
    """Grid = (B, n_par, n_blk); accumulates per-(b, p) sums over spatial."""
    p_id = pl.program_id(1)
    s_id = pl.program_id(2)

    @pl.when(s_id == 0)
    def _():
        tp_ref[...] = jnp.zeros_like(tp_ref)
        sp_ref[...] = jnp.zeros_like(sp_ref)
        sy_ref[...] = jnp.zeros_like(sy_ref)
        ce_ref[...] = jnp.zeros_like(ce_ref)

    x = x_ref[0].astype(jnp.float32)            # (C, s_blk)  cast in VMEM
    labels = y_ref[0].astype(jnp.int32)         # (1, s_blk)  int8 -> int32

    # ---- fused softmax over the class (sublane) axis -----------------------
    m = jnp.max(x, axis=0, keepdims=True)       # (1, s_blk)
    e = jnp.exp(x - m)                          # EUP
    se = jnp.sum(e, axis=0, keepdims=True)      # (1, s_blk)
    prob = e * (1.0 / se)                       # one reciprocal per column
    log_se = jnp.log(se)

    # ---- one-hot via a (C, 1) iota broadcast against the label row ---------
    ch = jax.lax.broadcasted_iota(jnp.int32, (n_classes, 1), 0)
    onehot = ch == labels                       # (C, s_blk) bool

    def _accumulate(prob_t, onehot_t, valid):
        sp_blk = prob_t * prob_t if square_dice else prob_t
        tp_ref[...] += jnp.sum(jnp.where(onehot_t, prob_t, 0.0), axis=-1,
                               keepdims=True).reshape(1, 1, n_classes, 1)
        sp_ref[...] += jnp.sum(sp_blk, axis=-1,
                               keepdims=True).reshape(1, 1, n_classes, 1)
        sy_ref[...] += jnp.sum(onehot_t.astype(jnp.float32), axis=-1,
                               keepdims=True).reshape(1, 1, n_classes, 1)
        # cross entropy: -log_softmax(x)[label] = m + log(se) - x[label]
        x_label = jnp.sum(jnp.where(onehot_t, x, 0.0), axis=0, keepdims=True)
        ce_blk = m + log_se - x_label           # (1, s_blk)
        if valid is not None:
            ce_blk = jnp.where(valid, ce_blk, 0.0)
        ce_ref[...] += jnp.sum(ce_blk, axis=-1,
                               keepdims=True).reshape(1, 1, 1, 1)

    if masked:
        g = p_id * n_blk + s_id                 # logical global spatial block
        needs_mask = (g + 1) * s_blk > s_valid  # only ragged tail blocks pay

        @pl.when(needs_mask)
        def _():
            col = jax.lax.broadcasted_iota(jnp.int32, (1, s_blk), 1) + g * s_blk
            valid = col < s_valid
            _accumulate(jnp.where(valid, prob, 0.0),     # select, not multiply:
                        jnp.logical_and(onehot, valid),  # OOB garbage/NaN safe
                        valid)

        @pl.when(jnp.logical_not(needs_mask))
        def _():
            _accumulate(prob, onehot, None)
    else:
        _accumulate(prob, onehot, None)


def dc_and_ce_loss(net_output, target, *,
                   batch_dice=False, do_bg=True, smooth=1.0,
                   square_dice=False,
                   weight_ce=1.0, weight_dice=1.0, log_dice=False,
                   aggregate="sum", ignore_label=None,
                   s_blk=None, n_par=None):
    """Forward of nnU-Net's DC_and_CE_loss (softmax + CE fused into one kernel).

    net_output: (B, C, *spatial) logits, any float dtype (kept native).
    target:     (B, 1, *spatial) or (B, *spatial) integer label map.
    """
    if aggregate != "sum":
        raise NotImplementedError("nah son")
    if ignore_label is not None:
        # TODO(synk): ignore_label masking (dice loss_mask + CE renormalization)
        # is not implemented in the fused kernel.
        raise NotImplementedError("ignore_label is not supported")

    x = net_output
    B, C = int(x.shape[0]), int(x.shape[1])
    S = int(np.prod(x.shape[2:]))

    # ---- target handling: mirrors target[:, 0].long() ----------------------
    y = target
    if y.ndim == x.ndim:
        y = y[:, 0]
    # labels ship as int8 (nnU-Net class counts are tiny): 1 B/voxel of HBM
    label_dtype = jnp.int8 if C <= 127 else jnp.int32
    y_itemsize = jnp.dtype(label_dtype).itemsize

    xf = x.reshape(B, C, S)                     # native dtype, no pad/up-cast copy
    yf = y.astype(label_dtype).reshape(B, 1, S)
    x_itemsize = xf.dtype.itemsize

    # ---- per-generation VMEM budget / tile selection ------------------------
    try:
        info = pltpu.get_tpu_info()
        vmem_cap = int(getattr(info, "vmem_capacity_bytes", 64 * 1024 * 1024))
    except Exception:
        vmem_cap = 64 * 1024 * 1024
    vmem_budget = max(16 * 1024 * 1024,
                      (min(vmem_cap, 128 * 1024 * 1024) * 3) // 4)

    if n_par is None:
        n_par = _num_tensorcores()
        # split the spatial reduction only when the batch can't feed both cores
        if n_par > 1 and not (B % n_par != 0 and S >= 2048):
            n_par = 1

    if s_blk is None:
        # double-buffered inputs + ~8 live (C, s_blk) f32 temporaries
        # (x, e, prob, onehot, masked prob, sp_blk, 2x where results)
        # + ~6 (1, s_blk) f32 rows (m, se, inv, log_se, ce, mask)
        per_elem = 2 * (C * x_itemsize + y_itemsize) + 8 * C * 4 + 6 * 4
        s_blk = vmem_budget // per_elem
        # keep each x block in the ~1-8 MiB sweet spot (kernel is HBM-bound)
        s_blk = min(s_blk, (8 * 1024 * 1024) // max(1, C * x_itemsize), 131072)
    s_blk = max(128, (int(s_blk) // 128) * 128)
    s_blk = min(s_blk, _round_up(int(pl.cdiv(S, n_par)), 128))

    n_blk = int(pl.cdiv(S, n_par * s_blk))
    masked = (n_par * n_blk * s_blk) != S
    n_valid_blk = int(pl.cdiv(S, s_blk))        # blocks touching valid data

    # ---- pallas_call ---------------------------------------------------------
    def _sp_index(b, p, s):
        g = p * n_blk + s
        # clamp so a fully-out-of-range tail block (possible with the n_par
        # split) never issues an out-of-bounds DMA; its contribution is
        # zeroed in-kernel via the logical column index.
        return (b, 0, jnp.minimum(g, n_valid_blk - 1))

    x_spec = pl.BlockSpec((1, C, s_blk), _sp_index)
    y_spec = pl.BlockSpec((1, 1, s_blk), _sp_index)
    stat_spec = pl.BlockSpec((1, 1, C, 1), lambda b, p, s: (b, p, 0, 0))
    ce_spec = pl.BlockSpec((1, 1, 1, 1), lambda b, p, s: (b, p, 0, 0))

    out_shapes = (
        jax.ShapeDtypeStruct((B, n_par, C, 1), jnp.float32),   # tp
        jax.ShapeDtypeStruct((B, n_par, C, 1), jnp.float32),   # sum p (or p^2)
        jax.ShapeDtypeStruct((B, n_par, C, 1), jnp.float32),   # sum onehot
        jax.ShapeDtypeStruct((B, n_par, 1, 1), jnp.float32),   # CE sum
    )

    S_grid = n_par * n_blk * s_blk
    cost = pl.CostEstimate(
        flops=int(14 * B * C * S_grid),
        transcendentals=int(B * S_grid * (C + 1)),
        bytes_accessed=int(B * C * S * x_itemsize + B * S * y_itemsize +
                           4 * B * n_par * (3 * C + 1)),
    )

    kernel = functools.partial(_dc_ce_stats_kernel, n_classes=C,
                               square_dice=bool(square_dice), s_valid=int(S),
                               s_blk=int(s_blk), n_blk=int(n_blk),
                               masked=bool(masked))

    tp, sp, sy, ce = pl.pallas_call(
        kernel,
        out_shape=out_shapes,
        grid_spec=pltpu.PrefetchScalarGridSpec(
            num_scalar_prefetch=0,
            grid=(B, n_par, n_blk),
            in_specs=[x_spec, y_spec],
            out_specs=(stat_spec, stat_spec, stat_spec, ce_spec),
        ),
        compiler_params=pltpu.CompilerParams(
            dimension_semantics=("parallel", "parallel", "arbitrary"),
            vmem_limit_bytes=int(vmem_budget)),
        cost_estimate=cost,
    )(xf, yf)

    # ---- tiny plain-JAX finalization ----------------------------------------
    tp = tp[..., 0].sum(axis=1)          # (B, C): fold TensorCore splits
    sp = sp[..., 0].sum(axis=1)
    sy = sy[..., 0].sum(axis=1)
    ce_loss = ce.sum() / (B * S)         # CrossEntropyLoss(reduction='mean')

    if batch_dice:
        tp, sp, sy = tp.sum(axis=0), sp.sum(axis=0), sy.sum(axis=0)

    if square_dice:                      # SoftDiceLossSquared
        dc = 2.0 * (tp + smooth) / (sp + sy + smooth)
    else:                                # SoftDiceLoss: 2tp+fp+fn == sp+sy
        dc = (2.0 * tp + smooth) / (sp + sy + smooth + 1e-8)

    if not do_bg:
        dc = dc[1:] if batch_dice else dc[:, 1:]
    dc_loss = -dc.mean()
    if log_dice:
        dc_loss = -jnp.log(-dc_loss)

    dc_loss = dc_loss if weight_dice != 0 else 0.0
    ce_loss = ce_loss if weight_ce != 0 else 0.0
    return weight_ce * ce_loss + weight_dice * dc_loss


def _reference(net_output, target, *, batch_dice=False, do_bg=True, smooth=1.0,
               square_dice=False, weight_ce=1.0, weight_dice=1.0,
               log_dice=False):
    """Pure-JAX reference matching the PyTorch DC_and_CE_loss forward."""
    x = net_output.astype(jnp.float32)
    y = target
    if y.ndim == x.ndim:
        y = y[:, 0]
    y = y.astype(jnp.int32)
    C = x.shape[1]
    p = jax.nn.softmax(x, axis=1)
    onehot = jax.nn.one_hot(y, C, axis=1, dtype=jnp.float32)
    axes = tuple([0] + list(range(2, x.ndim))) if batch_dice \
        else tuple(range(2, x.ndim))
    if square_dice:
        inter = jnp.sum(p * onehot, axis=axes) + smooth
        denom = jnp.sum(p * p + onehot * onehot, axis=axes) + smooth
        dc = 2.0 * inter / denom
    else:
        tp = jnp.sum(p * onehot, axis=axes)
        fp = jnp.sum(p * (1.0 - onehot), axis=axes)
        fn = jnp.sum((1.0 - p) * onehot, axis=axes)
        dc = (2.0 * tp + smooth) / (2.0 * tp + fp + fn + smooth + 1e-8)
    if not do_bg:
        dc = dc[1:] if batch_dice else dc[:, 1:]
    dc_loss = -dc.mean()
    if log_dice:
        dc_loss = -jnp.log(-dc_loss)
    logp = jax.nn.log_softmax(x, axis=1)
    ce_loss = (-jnp.take_along_axis(logp, y[:, None], axis=1)).mean()
    return weight_ce * ce_loss + weight_dice * dc_loss


def _check(name, got, ref, tol=2e-5):
    got = float(jax.block_until_ready(got))
    ref = float(jax.block_until_ready(ref))
    assert abs(got - ref) <= tol * max(1.0, abs(ref)), (name, got, ref)


if __name__ == "__main__":
    key = jax.random.PRNGKey(0)
    kx, ky, kx2, ky2 = jax.random.split(key, 4)

    B, C, H, W = 2, 4, 16, 16
    x_f32 = jax.random.normal(kx, (B, C, H, W), dtype=jnp.float32)
    x_bf16 = x_f32.astype(jnp.bfloat16)
    y = jax.random.randint(ky, (B, 1, H, W), 0, C, dtype=jnp.int32)

    # 1) defaults (softmax dice + CE), f32 logits
    _check("default_f32", dc_and_ce_loss(x_f32, y), _reference(x_f32, y))

    # 2) native bf16 logits (cast happens inside the kernel)
    _check("default_bf16", dc_and_ce_loss(x_bf16, y), _reference(x_bf16, y))

    # 3) batch_dice + no background + weights + log_dice
    kw = dict(batch_dice=True, do_bg=False, weight_ce=0.3, weight_dice=1.7,
              log_dice=True)
    _check("batch_dice", dc_and_ce_loss(x_f32, y, **kw),
           _reference(x_f32, y, **kw))

    # 4) squared dice variant
    _check("square_dice", dc_and_ce_loss(x_f32, y, square_dice=True),
           _reference(x_f32, y, square_dice=True))

    # 5) B=1, odd spatial size: ragged tail block, in-kernel index masking
    x_small = jax.random.normal(kx2, (1, 3, 17, 17), dtype=jnp.bfloat16)
    y_small = jax.random.randint(ky2, (1, 1, 17, 17), 0, 3, dtype=jnp.int32)
    _check("padded_tail", dc_and_ce_loss(x_small, y_small),
           _reference(x_small, y_small))

    # 6) forced small tiles: multi-block spatial reduction + masked tail block
    x_multi = jax.random.normal(kx, (2, 5, 10, 37), dtype=jnp.float32)
    y_multi = jax.random.randint(ky2, (2, 1, 10, 37), 0, 5, dtype=jnp.int32)
    _check("multi_block", dc_and_ce_loss(x_multi, y_multi, s_blk=128),
           _reference(x_multi, y_multi))

    # 7) forced 2-way spatial split with a fully out-of-range tail block
    #    (exercises the index_map clamp on every TPU generation)
    x_clamp = jax.random.normal(kx2, (1, 4, 257), dtype=jnp.float32)
    y_clamp = jax.random.randint(ky, (1, 1, 257), 0, 4, dtype=jnp.int32)
    _check("clamped_split",
           dc_and_ce_loss(x_clamp, y_clamp, s_blk=128, n_par=2),
           _reference(x_clamp, y_clamp))

    print("KERNEL_OK")
</pallas_src>

<mosaic_0001>
module attributes {stable_mosaic.version = 11 : i64} {
  func.func @_dc_ce_stats_kernel(%arg0: i32, %arg1: i32, %arg2: i32, %arg3: memref<1x4x256xf32, #tpu.memory_space<vmem>>, %arg4: memref<1x1x256xi8, #tpu.memory_space<vmem>>, %arg5: memref<1x1x4x1xf32, #tpu.memory_space<vmem>>, %arg6: memref<1x1x4x1xf32, #tpu.memory_space<vmem>>, %arg7: memref<1x1x4x1xf32, #tpu.memory_space<vmem>>, %arg8: memref<1x1x1x1xf32, #tpu.memory_space<vmem>>) attributes {dimension_semantics = [#tpu.dimension_semantics<parallel>, #tpu.dimension_semantics<parallel>, #tpu.dimension_semantics<arbitrary>], iteration_bounds = array<i64: 2, 1, 1>, scalar_prefetch = 0 : i64, scratch_operands = 0 : i64, tpu.core_type = #tpu.core_type<tc>, window_params = [{transform_indices = @transform_0, window_bounds = array<i64: 1, 4, 256>}, {transform_indices = @transform_1, window_bounds = array<i64: 1, 1, 256>}, {transform_indices = @transform_2, window_bounds = array<i64: 1, 1, 4, 1>}, {transform_indices = @transform_3, window_bounds = array<i64: 1, 1, 4, 1>}, {transform_indices = @transform_4, window_bounds = array<i64: 1, 1, 4, 1>}, {transform_indices = @transform_5, window_bounds = array<i64: 1, 1, 1, 1>}]} {
    %c0_i32 = arith.constant 0 : i32
    %0 = arith.cmpi eq, %arg2, %c0_i32 : i32
    %1 = arith.extui %0 : i1 to i32
    %c0_i32_0 = arith.constant 0 : i32
    %2 = arith.cmpi ne, %1, %c0_i32_0 : i32
    scf.if %2 {
      %cst_47 = arith.constant 0.000000e+00 : f32
      %58 = vector.broadcast %cst_47 : f32 to vector<1x1x4x1xf32>
      %c0_48 = arith.constant 0 : index
      %c0_49 = arith.constant 0 : index
      %c0_50 = arith.constant 0 : index
      %c0_51 = arith.constant 0 : index
      %59 = vector.load %arg5[%c0_48, %c0_49, %c0_50, %c0_51] : memref<1x1x4x1xf32, #tpu.memory_space<vmem>>, vector<1x1x4x1xf32>
      tpu.vector_store %arg5[%c0_48, %c0_49, %c0_50, %c0_51], %58 {strides = array<i32>} : memref<1x1x4x1xf32, #tpu.memory_space<vmem>>, vector<1x1x4x1xf32>,
      %cst_52 = arith.constant 0.000000e+00 : f32
      %60 = vector.broadcast %cst_52 : f32 to vector<1x1x4x1xf32>
      %c0_53 = arith.constant 0 : index
      %c0_54 = arith.constant 0 : index
      %c0_55 = arith.constant 0 : index
      %c0_56 = arith.constant 0 : index
      %61 = vector.load %arg6[%c0_53, %c0_54, %c0_55, %c0_56] : memref<1x1x4x1xf32, #tpu.memory_space<vmem>>, vector<1x1x4x1xf32>
      tpu.vector_store %arg6[%c0_53, %c0_54, %c0_55, %c0_56], %60 {strides = array<i32>} : memref<1x1x4x1xf32, #tpu.memory_space<vmem>>, vector<1x1x4x1xf32>,
      %cst_57 = arith.constant 0.000000e+00 : f32
      %62 = vector.broadcast %cst_57 : f32 to vector<1x1x4x1xf32>
      %c0_58 = arith.constant 0 : index
      %c0_59 = arith.constant 0 : index
      %c0_60 = arith.constant 0 : index
      %c0_61 = arith.constant 0 : index
      %63 = vector.load %arg7[%c0_58, %c0_59, %c0_60, %c0_61] : memref<1x1x4x1xf32, #tpu.memory_space<vmem>>, vector<1x1x4x1xf32>
      tpu.vector_store %arg7[%c0_58, %c0_59, %c0_60, %c0_61], %62 {strides = array<i32>} : memref<1x1x4x1xf32, #tpu.memory_space<vmem>>, vector<1x1x4x1xf32>,
      %cst_62 = arith.constant 0.000000e+00 : f32
      %64 = vector.broadcast %cst_62 : f32 to vector<1x1x1x1xf32>
      %c0_63 = arith.constant 0 : index
      %c0_64 = arith.constant 0 : index
      %c0_65 = arith.constant 0 : index
      %c0_66 = arith.constant 0 : index
      %65 = vector.load %arg8[%c0_63, %c0_64, %c0_65, %c0_66] : memref<1x1x1x1xf32, #tpu.memory_space<vmem>>, vector<1x1x1x1xf32>
      tpu.vector_store %arg8[%c0_63, %c0_64, %c0_65, %c0_66], %64 {strides = array<i32>} : memref<1x1x1x1xf32, #tpu.memory_space<vmem>>, vector<1x1x1x1xf32>,
    } else {
    }
    %c0 = arith.constant 0 : index
    %c0_1 = arith.constant 0 : index
    %c0_2 = arith.constant 0 : index
    %3 = vector.load %arg3[%c0, %c0_1, %c0_2] : memref<1x4x256xf32, #tpu.memory_space<vmem>>, vector<1x4x256xf32>
    %4 = vector.shape_cast %3 : vector<1x4x256xf32> to vector<4x256xf32>
    %c0_3 = arith.constant 0 : index
    %c0_4 = arith.constant 0 : index
    %c0_5 = arith.constant 0 : index
    %5 = vector.load %arg4[%c0_3, %c0_4, %c0_5] : memref<1x1x256xi8, #tpu.memory_space<vmem>>, vector<1x1x256xi8>
    %6 = vector.shape_cast %5 : vector<1x1x256xi8> to vector<1x256xi8>
    %7 = arith.extsi %6 : vector<1x256xi8> to vector<1x256xi32>
    %cst = arith.constant dense<0xFF800000> : vector<256xf32>
    %8 = vector.multi_reduction <maximumf>, %4, %cst [0] : vector<4x256xf32> to vector<256xf32>
    %9 = vector.shape_cast %8 : vector<256xf32> to vector<1x256xf32>
    %10 = vector.broadcast %9 : vector<1x256xf32> to vector<4x256xf32>
    %11 = arith.subf %4, %10 : vector<4x256xf32>
    %12 = math.exp %11 : vector<4x256xf32>
    %cst_6 = arith.constant dense<0.000000e+00> : vector<256xf32>
    %13 = vector.multi_reduction <add>, %12, %cst_6 [0] : vector<4x256xf32> to vector<256xf32>
    %14 = vector.shape_cast %13 : vector<256xf32> to vector<1x256xf32>
    %cst_7 = arith.constant 1.000000e+00 : f32
    %15 = vector.broadcast %cst_7 : f32 to vector<1x256xf32>
    %16 = arith.divf %15, %14 : vector<1x256xf32>
    %17 = vector.broadcast %16 : vector<1x256xf32> to vector<4x256xf32>
    %18 = arith.mulf %12, %17 : vector<4x256xf32>
    %19 = math.log %14 : vector<1x256xf32>
    %20 = tpu.iota {dimensions = array<i32: 0>} : vector<4x1xi32>
    %21 = vector.broadcast %20 : vector<4x1xi32> to vector<4x256xi32>
    %22 = vector.broadcast %7 : vector<1x256xi32> to vector<4x256xi32>
    %23 = arith.cmpi eq, %21, %22 : vector<4x256xi32>
    %c0_8 = arith.constant 0 : index
    %c0_9 = arith.constant 0 : index
    %c0_10 = arith.constant 0 : index
    %c0_11 = arith.constant 0 : index
    %24 = vector.load %arg5[%c0_8, %c0_9, %c0_10, %c0_11] : memref<1x1x4x1xf32, #tpu.memory_space<vmem>>, vector<1x1x4x1xf32>
    %cst_12 = arith.constant 0.000000e+00 : f32
    %25 = vector.broadcast %cst_12 : f32 to vector<4x256xf32>
    %26 = arith.select %23, %18, %25 : vector<4x256xi1>, vector<4x256xf32>
    %cst_13 = arith.constant dense<0.000000e+00> : vector<4xf32>
    %27 = vector.multi_reduction <add>, %26, %cst_13 [1] : vector<4x256xf32> to vector<4xf32>
    %28 = vector.shape_cast %27 : vector<4xf32> to vector<4x1xf32>
    %29 = vector.shape_cast %28 : vector<4x1xf32> to vector<1x1x4x1xf32>
    %30 = arith.addf %24, %29 : vector<1x1x4x1xf32>
    %c0_14 = arith.constant 0 : index
    %c0_15 = arith.constant 0 : index
    %c0_16 = arith.constant 0 : index
    %c0_17 = arith.constant 0 : index
    %31 = vector.load %arg5[%c0_14, %c0_15, %c0_16, %c0_17] : memref<1x1x4x1xf32, #tpu.memory_space<vmem>>, vector<1x1x4x1xf32>
    tpu.vector_store %arg5[%c0_14, %c0_15, %c0_16, %c0_17], %30 {strides = array<i32>} : memref<1x1x4x1xf32, #tpu.memory_space<vmem>>, vector<1x1x4x1xf32>,
    %c0_18 = arith.constant 0 : index
    %c0_19 = arith.constant 0 : index
    %c0_20 = arith.constant 0 : index
    %c0_21 = arith.constant 0 : index
    %32 = vector.load %arg6[%c0_18, %c0_19, %c0_20, %c0_21] : memref<1x1x4x1xf32, #tpu.memory_space<vmem>>, vector<1x1x4x1xf32>
    %cst_22 = arith.constant dense<0.000000e+00> : vector<4xf32>
    %33 = vector.multi_reduction <add>, %18, %cst_22 [1] : vector<4x256xf32> to vector<4xf32>
    %34 = vector.shape_cast %33 : vector<4xf32> to vector<4x1xf32>
    %35 = vector.shape_cast %34 : vector<4x1xf32> to vector<1x1x4x1xf32>
    %36 = arith.addf %32, %35 : vector<1x1x4x1xf32>
    %c0_23 = arith.constant 0 : index
    %c0_24 = arith.constant 0 : index
    %c0_25 = arith.constant 0 : index
    %c0_26 = arith.constant 0 : index
    %37 = vector.load %arg6[%c0_23, %c0_24, %c0_25, %c0_26] : memref<1x1x4x1xf32, #tpu.memory_space<vmem>>, vector<1x1x4x1xf32>
    tpu.vector_store %arg6[%c0_23, %c0_24, %c0_25, %c0_26], %36 {strides = array<i32>} : memref<1x1x4x1xf32, #tpu.memory_space<vmem>>, vector<1x1x4x1xf32>,
    %c0_27 = arith.constant 0 : index
    %c0_28 = arith.constant 0 : index
    %c0_29 = arith.constant 0 : index
    %c0_30 = arith.constant 0 : index
    %38 = vector.load %arg7[%c0_27, %c0_28, %c0_29, %c0_30] : memref<1x1x4x1xf32, #tpu.memory_space<vmem>>, vector<1x1x4x1xf32>
    %39 = arith.extui %23 : vector<4x256xi1> to vector<4x256xi32>
    %40 = arith.sitofp %39 : vector<4x256xi32> to vector<4x256xf32>
    %cst_31 = arith.constant dense<0.000000e+00> : vector<4xf32>
    %41 = vector.multi_reduction <add>, %40, %cst_31 [1] : vector<4x256xf32> to vector<4xf32>
    %42 = vector.shape_cast %41 : vector<4xf32> to vector<4x1xf32>
    %43 = vector.shape_cast %42 : vector<4x1xf32> to vector<1x1x4x1xf32>
    %44 = arith.addf %38, %43 : vector<1x1x4x1xf32>
    %c0_32 = arith.constant 0 : index
    %c0_33 = arith.constant 0 : index
    %c0_34 = arith.constant 0 : index
    %c0_35 = arith.constant 0 : index
    %45 = vector.load %arg7[%c0_32, %c0_33, %c0_34, %c0_35] : memref<1x1x4x1xf32, #tpu.memory_space<vmem>>, vector<1x1x4x1xf32>
    tpu.vector_store %arg7[%c0_32, %c0_33, %c0_34, %c0_35], %44 {strides = array<i32>} : memref<1x1x4x1xf32, #tpu.memory_space<vmem>>, vector<1x1x4x1xf32>,
    %cst_36 = arith.constant 0.000000e+00 : f32
    %46 = vector.broadcast %cst_36 : f32 to vector<4x256xf32>
    %47 = arith.select %23, %4, %46 : vector<4x256xi1>, vector<4x256xf32>
    %cst_37 = arith.constant dense<0.000000e+00> : vector<256xf32>
    %48 = vector.multi_reduction <add>, %47, %cst_37 [0] : vector<4x256xf32> to vector<256xf32>
    %49 = vector.shape_cast %48 : vector<256xf32> to vector<1x256xf32>
    %50 = arith.addf %9, %19 : vector<1x256xf32>
    %51 = arith.subf %50, %49 : vector<1x256xf32>
    %c0_38 = arith.constant 0 : index
    %c0_39 = arith.constant 0 : index
    %c0_40 = arith.constant 0 : index
    %c0_41 = arith.constant 0 : index
    %52 = vector.load %arg8[%c0_38, %c0_39, %c0_40, %c0_41] : memref<1x1x1x1xf32, #tpu.memory_space<vmem>>, vector<1x1x1x1xf32>
    %cst_42 = arith.constant dense<0.000000e+00> : vector<1xf32>
    %53 = vector.multi_reduction <add>, %51, %cst_42 [1] : vector<1x256xf32> to vector<1xf32>
    %54 = vector.shape_cast %53 : vector<1xf32> to vector<1x1xf32>
    %55 = vector.shape_cast %54 : vector<1x1xf32> to vector<1x1x1x1xf32>
    %56 = arith.addf %52, %55 : vector<1x1x1x1xf32>
    %c0_43 = arith.constant 0 : index
    %c0_44 = arith.constant 0 : index
    %c0_45 = arith.constant 0 : index
    %c0_46 = arith.constant 0 : index
    %57 = vector.load %arg8[%c0_43, %c0_44, %c0_45, %c0_46] : memref<1x1x1x1xf32, #tpu.memory_space<vmem>>, vector<1x1x1x1xf32>
    tpu.vector_store %arg8[%c0_43, %c0_44, %c0_45, %c0_46], %56 {strides = array<i32>} : memref<1x1x1x1xf32, #tpu.memory_space<vmem>>, vector<1x1x1x1xf32>,
    return
  }
  func.func @transform_0(%arg0: i32, %arg1: i32, %arg2: i32) -> (i32, i32, i32) {
    %c1_i32 = arith.constant 1 : i32
    %0 = arith.muli %arg1, %c1_i32 : i32
    %1 = arith.addi %0, %arg2 : i32
    %c0_i32 = arith.constant 0 : i32
    %2 = arith.minsi %1, %c0_i32 : i32
    %c0_i32_0 = arith.constant 0 : i32
    %c0_i32_1 = arith.constant 0 : i32
    return %arg0, %c0_i32_0, %2 : i32, i32, i32
  }
  func.func @transform_1(%arg0: i32, %arg1: i32, %arg2: i32) -> (i32, i32, i32) {
    %c1_i32 = arith.constant 1 : i32
    %0 = arith.muli %arg1, %c1_i32 : i32
    %1 = arith.addi %0, %arg2 : i32
    %c0_i32 = arith.constant 0 : i32
    %2 = arith.minsi %1, %c0_i32 : i32
    %c0_i32_0 = arith.constant 0 : i32
    %c0_i32_1 = arith.constant 0 : i32
    return %arg0, %c0_i32_0, %2 : i32, i32, i32
  }
  func.func @transform_2(%arg0: i32, %arg1: i32, %arg2: i32) -> (i32, i32, i32, i32) {
    %c0_i32 = arith.constant 0 : i32
    %c0_i32_0 = arith.constant 0 : i32
    %c0_i32_1 = arith.constant 0 : i32
    return %arg0, %arg1, %c0_i32, %c0_i32_0 : i32, i32, i32, i32
  }
  func.func @transform_3(%arg0: i32, %arg1: i32, %arg2: i32) -> (i32, i32, i32, i32) {
    %c0_i32 = arith.constant 0 : i32
    %c0_i32_0 = arith.constant 0 : i32
    %c0_i32_1 = arith.constant 0 : i32
    return %arg0, %arg1, %c0_i32, %c0_i32_0 : i32, i32, i32, i32
  }
  func.func @transform_4(%arg0: i32, %arg1: i32, %arg2: i32) -> (i32, i32, i32, i32) {
    %c0_i32 = arith.constant 0 : i32
    %c0_i32_0 = arith.constant 0 : i32
    %c0_i32_1 = arith.constant 0 : i32
    return %arg0, %arg1, %c0_i32, %c0_i32_0 : i32, i32, i32, i32
  }
  func.func @transform_5(%arg0: i32, %arg1: i32, %arg2: i32) -> (i32, i32, i32, i32) {
    %c0_i32 = arith.constant 0 : i32
    %c0_i32_0 = arith.constant 0 : i32
    %c0_i32_1 = arith.constant 0 : i32
    return %arg0, %arg1, %c0_i32, %c0_i32_0 : i32, i32, i32, i32
  }
}

</mosaic_0001>

<bundles_post_ra>
// kernel: tpu_custom_call.1
= control target key start
LH: loop header
LB: loop body
LE: loop exit
PB: predicated region body
PF: predicated region fallthrough
CT: control target
= control target key end

     0   :  { %11 = vsyncpa [#allocation3], 0  ;;  %s1162_s0 = inlined_call_operand.hbm [shape: f32[2,4,256], index: 0, kind: input, shape index: {}]   ;;  %s1163_s1 = inlined_call_operand.vmem [shape: s8[2,1,256], index: 1, kind: input, shape index: {}]   ;;  %s1164_s2 = inlined_call_operand.vmem [shape: f32[2,1,4,1], index: 2, kind: output, shape index: {0}]   ;;  %s1165_s3 = inlined_call_operand.vmem [shape: f32[2,1,4,1], index: 3, kind: output, shape index: {1}]   ;;  %s1166_s4 = inlined_call_operand.vmem [shape: f32[2,1,4,1], index: 4, kind: output, shape index: {2}]   ;;  %s1167_s5 = inlined_call_operand.vmem [shape: f32[2,1,1,1], index: 5, kind: output, shape index: {3}]  }
   0x1   :  { %13 = vsyncpa [#allocation3 + $0x1], 0  ;;  %s961_s18 = smov 0   ;;  %s963_s19 = smov 0  }
   0x2   :  { %s965_s20 = smov 0   ;;  %s967_s21 = smov 0  }
   0x3   :  { %s969_s22 = smov 0   ;;  %s971_s23 = smov 0  }
   0x4 LB: > { %s762_s24 = sadd.s32 4294967295, %s927_s23   ;;  %s38_s25 = sadd.s32 1, %s923_s22  ;;  %s927_s23 = sphi %s971_s23, %s19_s23   ;;  %s923_s22 = sphi %s969_s22, %s1181_s22   ;;  %s919_s21 = sphi %s967_s21, %s1180_s21   ;;  %s915_s20 = sphi %s965_s20, %s1179_s20   ;;  %s911_s19 = sphi %s963_s19, %s1178_s19   ;;  %s907_s18 = sphi %s961_s18, %s1177_s18  }
   0x5   : > { %p40_p0 = scmp.ge.s32.totalorder %s38_s25, 2  ;;  %s53_s26 = sadd.s32 1, %s915_s20 }
   0x6   : > { %p60_p1 = scmp.ne.s32.totalorder %s915_s20, %s911_s19  ;;  %p61_p2 = scmp.eq.s32.totalorder %s927_s23, 0 }
   0x7   : > { %s1183_s25 = smov (%p40_p0, %s38_s25), 0  ;;  %p66_p4 = scmp.ne.s32.totalorder %s911_s19, %s907_s18 }
   0x8   : > { %p997_p3 = por %p61_p2, %p60_p1  ;;  %s48_s28 = ssub.s32 %s923_s22, %s1183_s25 }
   0x9   : > { %p67_p5 = scmp.eq.s32.totalorder %s762_s24, 0  ;;  %p51_p6 = scmp.eq.s32.totalorder %s48_s28, 0 }
   0xa   : > { %p786_p8 = scmp.lt.s32.totalorder %s927_s23, 2  ;;  %s236_s6 = sand.u32 1, %s915_s20  }
   0xb   : > { %p1004_p7 = por %p67_p5, %p66_p4  ;;  %s779_s7 = sshll.u32 %s923_s22, 7 }
   0xc   : > { %s1010_s30 = scalar_select %p51_p6, %s915_s20, %s53_s26  }
   0xd   : > { %s766_s8 = sshll.u32 %s236_s6, 3  ;;  %s1017_s11 = scalar_lea.hbm %s1162_s0, %s779_s7 }
   0xe   : > { %s240_s12 = scalar_lea.vmem [#allocation2], %s766_s8  ;;  %p1021_p9 = pnand %p786_p8, %p997_p3 }
   0xf   : > { %s253_s13 = sshll.u32 %s240_s12, 4  ;;  %s237_s15 = scalar_lea.sflag [#allocation3], %s236_s6  ;;  %s1025_s13 = int_to_ptr.vmem [resolvable:$true] %s253_s13 }
  0x10   : > { %s847_s16 = scalar_lea.hbm %s1017_s11, 128  ;;  %p849_p13 = pneg %p1021_p9 }
  0x11   : > { %p848_p12 = scmp.ne.s32.totalorder %s1017_s11, %s847_s16  ;;  %s852_s24 = scalar_lea.hbm %s1162_s0, 256 }
  0x12   : > { %p853_p2 = scmp.lt.u32.totalorder %s1017_s11, %s1162_s0  ;;  %p854_p3 = scmp.lt.u32.totalorder %s852_s24, %s847_s16 }
  0x13   : > { %p850_p0 = pnand %p849_p13, %p848_p12  ;;  %p856_p5 = scmp.lt.u32.totalorder %s847_s16, %s1017_s11 }
  0x14   : > { %p855_p4 = por %p854_p3, %p853_p2 }
  0x15   : > { %p851_p1 = pneg %p850_p0 }
  0x16   : > { %p857_p6 = por %p856_p5, %p855_p4 }
  0x18   : > { %p858_p8 = pnand %p857_p6, %p851_p1 }
  0x1a   : > { %861 = shalt.err (!%p858_p8)
}
  0x1b   : > { %s862_s28 = scalar_lea.vmem %s1025_s13, 128  ;;  %s929_s6 = smov [#allocation2]  }
  0x1c   : > { %p863_p12 = scmp.ne.s32.totalorder %s1025_s13, %s862_s28  ;;  %s867_s7 = sshll.u32 %s929_s6, 4  ;;  %s868_s7 = int_to_ptr.vmem [resolvable:$false] %s867_s7 }
  0x1d   : > { %s869_s8 = scalar_lea.vmem %s868_s7, 256  ;;  %p870_p11 = scmp.lt.s32.totalorder %s1025_s13, %s868_s7 }
  0x1e   : > { %p865_p0 = pnand %p863_p12, %p849_p13  ;;  %p871_p2 = scmp.lt.s32.totalorder %s869_s8, %s862_s28 }
  0x20   : > { %p866_p10 = pneg %p865_p0  ;;  %p872_p3 = por %p871_p2, %p870_p11 }
  0x22   : > { %p873_p4 = pnand %p872_p3, %p866_p10 }
  0x24   : > { %876 = shalt.err (!%p873_p4)
}
  0x25   : > { %785 = dma.hbm_to_vmem [thread:$0]  (!%p1021_p9), %s1017_s11, 128, %s1025_s13, %s237_s15  }
  0x26   : > { %p1171_p1 = scmp.lt.s32.totalorder %s927_s23, 3  ;;  %p1172_p5 = scmp.ge.s32.totalorder %s927_s23, 1 }
  0x28   : > { %p277_p13 = pnand %p1172_p5, %p1171_p1 }
  0x29   : > { %s282_s9 = sand.u32 (!%p277_p13), 1, %s911_s19  }
  0x2a   : > { %280 = sbr.rel (%p277_p13) target bundleno = 268 (0x10c), region = 28  ;;  %s770_s10 = sshll.u32 (!%p277_p13), %s282_s9, 3 }
  0x2b   : > { %s283_s12 = scalar_lea.sflag (!%p277_p13), [#allocation3], %s282_s9  ;;  %s286_s16 = scalar_lea.vmem (!%p277_p13), [#allocation2], %s770_s10 }
  0x31   : > { %902 = dma.done.wait (%p1004_p7), %s283_s12, 128  }
  0x32   : > { %904 = vsyncadd (%p1004_p7), %s283_s12, 4294967168  ;;  %p354_p10 = scmp.lt.s32.totalorder %s919_s21, 1  ;;  %v460_v0 = vlaneseq  ;;  %vm396_vm0 = vcmask 3072   ;;  %vm408_vm1 = vcmask 1043456   ;;  %v930_v4 = vmov 0.0   ;;  %v402_v6 = vld [vmem:[%s286_s16] sm:$0xff] }
  0x33   : > { %v406_v8 = vcombine.high %v402_v6, %v402_v6  ;;  %v409_v9 = vsel %vm408_vm1, %v402_v6, -inf  ;;  %vm400_vm4 = vcmask 0  }
  0x34   : > { %s1185_s21 = smov (!%p354_p10, %s919_s21), 1  ;;  %v461_v1 = vshrl.u32 %v460_v0, 7  ;;  %v410_v10 = vrot.slane %v409_v9, 4 }
  0x35   : > { %s771_s11 = sshll.u32 %s1185_s21, 1  ;;  %s1069_s13 = sshll.u32 %s1185_s21, 2  ;;  %v416_v13 = vsel %vm408_vm1, %v406_v8, -inf }
  0x36   : > { %s360_s17 = scalar_lea.vmem %s1163_s1, %s771_s11  ;;  %s1078_s24 = scalar_lea.vmem %s1166_s4, %s1069_s13  ;;  %v464_v2 = vsub.s32 0, %v461_v1  ;;  %v468_v3 = vsub.s32 4, %v461_v1  ;;  %v411_v14 = vmax.f32 %v409_v9, %v410_v10  ;;  %v417_v15 = vrot.slane %v416_v13, 4 }
  0x37   : > { %399 = vst.msk [vmem:[%s1078_s24] sm:$0xf] %vm396_vm0, %v930_v4  ;;  %v403_v5 = vld [vmem:[%s360_s17] sm:$0x3]  ;;  %s1105_s28 = scalar_lea.vmem %s1164_s2, %s1069_s13  ;;  %s391_s8 = scalar_lea.vmem %s1167_s5, %s1185_s21 }
  0x38   : > { %v404_v7 = vunpack.c.0.s8 %v403_v5  ;;  %v412_v18 = vrot.slane %v411_v14, 2  ;;  %v418_v19 = vmax.f32 %v416_v13, %v417_v15  ;;  %397 = vst.msk [vmem:[%s1105_s28] sm:$0xf] %vm396_vm0, %v930_v4  ;;  %s378_s12 = scalar_lea.vmem %s1165_s3, %s1069_s13 }
  0x39   : > { %401 = vst.msk [vmem:[%s391_s8] sm:$0x1] %vm400_vm4, %v930_v4 }
  0x3a   : > { %v465_v11 = vrot.slane %v404_v7, %v464_v2  ;;  %v469_v12 = vrot.slane %v404_v7, %v468_v3  ;;  %v413_v24 = vmax.f32 %v411_v14, %v412_v18  ;;  %v419_v25 = vrot.slane %v418_v19, 2  ;;  %398 = vst.msk [vmem:[%s378_s12] sm:$0xf] %vm396_vm0, %v930_v4 }
  0x3c   : > { %v473_v16 = vrot.slane %v465_v11, %v464_v2  ;;  %v477_v17 = vrot.slane %v469_v12, %v464_v2  ;;  %v414_v29 = vrot.slane %v413_v24, 1  ;;  %v420_v30 = vmax.f32 %v418_v19, %v419_v25 }
  0x3e   : > { %vm1085_vm2 = vcmp.eq.s32.totalorder %v461_v1, %v473_v16  ;;  %vm1089_vm3 = vcmp.eq.s32.totalorder %v461_v1, %v477_v17  ;;  %v415_v31 = vmax.f32 %v413_v24, %v414_v29  ;;  %v421_v32 = vrot.slane %v420_v30, 1  ;;  %v502_v21 = vld [vmem:[%s1078_s24] sm:$0xf] }
  0x3f   : > { %v775_v22 = vsel %vm1085_vm2, 1.0, %v930_v4  ;;  %v776_v23 = vsel %vm1089_vm3, 1.0, %v930_v4  ;;  %v514_v38 = vsel %vm1085_vm2, %v402_v6, 0.0  ;;  %v515_v41 = vsel %vm1089_vm3, %v406_v8, 0.0 }
  0x40   : > { %v507_v26 = vsel %vm408_vm1, %v775_v22, 0.0  ;;  %v508_v27 = vsel %vm408_vm1, %v776_v23, 0.0  ;;  %v422_v33 = vmax.f32 %v420_v30, %v421_v32  ;;  %v516_v43 = vsel %vm408_vm1, %v514_v38, 0.0  ;;  %v480_v32 = vld [vmem:[%s1105_s28] sm:$0xf] }
  0x41   : > { %v509_v28 = vadd.f32 %v508_v27, %v507_v26  ;;  %v523_v47 = vsel %vm408_vm1, %v515_v41, 0.0  ;;  %v517_v48 = vrot.slane %v516_v43, 4 }
  0x42   : > { %v425_v34 = vcombine.low %v415_v31, %v422_v33  ;;  %v524_v51 = vrot.slane %v523_v47, 4 }
  0x43   : > { %510 = vadd.xlane.f32.xlu1 %v509_v28  ;;  %v518_v54 = vadd.f32 %v517_v48, %v516_v43 }
  0x44   : > { %v427_v35 = vsub.f32 %v402_v6, %v425_v34  ;;  %v525_v57 = vadd.f32 %v524_v51, %v523_v47 }
  0x45   : > { %v519_v61 = vrot.slane %v518_v54, 2 }
  0x46   : > { %v428_v36 = vmul.f32 1.442695, %v427_v35  ;;  %v526_v62 = vrot.slane %v525_v57, 2 }
  0x47   : > { %v520_v63 = vadd.f32 %v519_v61, %v518_v54 }
  0x48   : > { %837 = vpow2.f32 %v428_v36  ;;  %v527_v0 = vadd.f32 %v526_v62, %v525_v57 }
  0x49   : > { %v521_v1 = vrot.slane %v520_v63, 1 }
  0x4a   : > { %v528_v3 = vrot.slane %v527_v0, 1 }
  0x4b   : > { %v522_v8 = vadd.f32 %v521_v1, %v520_v63 }
  0x4c   : > { %v529_v12 = vadd.f32 %v528_v3, %v527_v0 }
  0x52   : > { %v838_v37 = vpop.eup %837 }
  0x53   : > { %v431_v39 = vcombine.high %v838_v37, %v838_v37  ;;  %v433_v40 = vsel %vm408_vm1, %v838_v37, 0.0 }
  0x54   : > { %v434_v42 = vrot.slane %v433_v40, 4 }
  0x55   : > { %v440_v44 = vsel %vm408_vm1, %v431_v39, 0.0 }
  0x56   : > { %v435_v45 = vadd.f32 %v434_v42, %v433_v40  ;;  %v441_v46 = vrot.slane %v440_v44, 4 }
  0x58   : > { %v436_v49 = vrot.slane %v435_v45, 2  ;;  %v442_v50 = vadd.f32 %v441_v46, %v440_v44 }
  0x5a   : > { %v437_v52 = vadd.f32 %v436_v49, %v435_v45  ;;  %v443_v53 = vrot.slane %v442_v50, 2 }
  0x5c   : > { %v438_v55 = vrot.slane %v437_v52, 1  ;;  %v444_v56 = vadd.f32 %v443_v53, %v442_v50 }
  0x5e   : > { %v439_v58 = vadd.f32 %v438_v55, %v437_v52  ;;  %v445_v59 = vrot.slane %v444_v56, 1 }
  0x60   : > { %v446_v60 = vadd.f32 %v445_v59, %v444_v56  ;;  %839 = vrcp.f32 %v439_v58 }
  0x61   : > { %841 = vlog2.f32 %v439_v58 }
  0x62   : > { %843 = vrcp.f32 %v446_v60 }
  0x63   : > { %845 = vlog2.f32 %v446_v60 }
  0x6a   : > { %v840_v2 = vpop.eup %839 }
  0x6b   : > { %v842_v5 = vpop.eup %841 }
  0x6c   : > { %v844_v6 = vpop.eup %843  ;;  %v457_v7 = vmul.f32 0.6931472, %v842_v5 }
  0x6d   : > { %v846_v9 = vpop.eup %845  ;;  %v453_v10 = vcombine.low %v840_v2, %v844_v6 }
  0x6e   : > { %v459_v11 = vmul.f32 0.6931472, %v846_v9  ;;  %v530_v13 = vadd.f32 %v457_v7, %v415_v31  ;;  %v534_v31 = vld [vmem:[%s391_s8] sm:$0x1] }
  0x6f   : > { %v455_v14 = vmul.f32 %v838_v37, %v453_v10  ;;  %v494_v37 = vld [vmem:[%s378_s12] sm:$0xf] }
  0x70   : > { %v531_v15 = vadd.f32 %v459_v11, %v422_v33  ;;  %v532_v16 = vsub.f32 %v530_v13, %v522_v8 }
  0x71   : > { %v482_v17 = vcombine.high %v455_v14, %v455_v14  ;;  %v484_v18 = vsel %vm1085_vm2, %v455_v14, 0.0  ;;  %v495_v26 = vsel %vm408_vm1, %v455_v14, 0.0 }
  0x72   : > { %v486_v19 = vsel %vm408_vm1, %v484_v18, 0.0  ;;  %v533_v22 = vsub.f32 %v531_v15, %v529_v12 }
  0x73   : > { %v485_v23 = vsel %vm1089_vm3, %v482_v17, 0.0  ;;  %v496_v27 = vsel %vm408_vm1, %v482_v17, 0.0 }
  0x74   : > { %v487_v24 = vsel %vm408_vm1, %v485_v23, 0.0  ;;  %v535_v25 = vadd.f32 %v533_v22, %v532_v16  ;;  %v497_v20 = vadd.f32 %v496_v27, %v495_v26 }
  0x75   : > { %v488_v28 = vadd.f32 %v487_v24, %v486_v19 }
  0x76   : > { %536 = vadd.xlane.f32.xlu1 %v535_v25 }
  0x77   : > { %489 = vadd.xlane.f32.xlu0 %v488_v28 }
  0x7b   : > { %498 = vadd.xlane.f32.xlu0 %v497_v20 }
  0xd0   : > { %v511_v29 = vpop.xlane.xlu1 %510 }
  0xd1   : > { %v512_v30 = vadd.f32 %v511_v29, %v502_v21 }
  0xd3   : > { %513 = vst.msk [vmem:[%s1078_s24] sm:$0xf] %vm396_vm0, %v512_v30 }
 0x103   : > { %v537_v33 = vpop.xlane.xlu1 %536 }
 0x104   : > { %v490_v34 = vpop.xlane.xlu0 %489  ;;  %v538_v35 = vadd.f32 %v537_v33, %v534_v31 }
 0x105   : > { %v491_v36 = vadd.f32 %v490_v34, %v480_v32 }
 0x106   : > { %540 = vst.msk [vmem:[%s391_s8] sm:$0x1] %vm400_vm4, %v538_v35 }
 0x107   : > { %493 = vst.msk [vmem:[%s1105_s28] sm:$0xf] %vm396_vm0, %v491_v36 }
 0x108   : > { %v499_v38 = vpop.xlane.xlu0 %498 }
 0x109   : > { %v500_v39 = vadd.f32 %v499_v38, %v494_v37 }
 0x10b   : > { %501 = vst.msk [vmem:[%s378_s12] sm:$0xf] %vm396_vm0, %v500_v39 }
 0x10c PF: > { %s19_s23 = sadd.s32 1, %s927_s23   ;;  %s1177_s18 = smov %s911_s19 }
 0x10d   : > { %p16_p7 = scmp.ge.s32.totalorder %s19_s23, 4   ;;  %s1178_s19 = smov %s915_s20 }
 0x10e   : > { %s1179_s20 = smov %s1010_s30  ;;  %s1180_s21 = smov %s923_s22 }
 0x10f   : > { %s1181_s22 = smov %s1183_s25  ;;  %18 = sbr.rel (!%p16_p7) target bundleno = 4 (0x4), region = 111 }
 0x116   :  { %624 = vsyncpa [#allocation3], 1 }
 0x117   :  { %626 = vsyncpa [#allocation3 + $0x1], 1 }

</bundles_post_ra>
